<compile_context>
chip_gen: v7x
topology: tpu7x:2x2x1
jax: 0.10.0
libtpu: 0.0.40
codegen_flags: <defaults>
</compile_context>

<pallas_src>
import functools

import jax
import jax.numpy as jnp
from jax.experimental import pallas as pl
from jax.experimental.pallas import tpu as pltpu

_LANES = 128


def _mlp_kernel(xs_ref, xd_ref, w1s_ref, w1d_ref, b1_ref, w2_ref, b2_ref, o_ref,
                *, num_timesteps):
    """Fused dense1 -> ReLU -> dense2 for one batch tile.

    xs_ref : (TILE_B, D_s)        static features
    xd_ref : (TILE_B, T, D_d)     dynamic features
    w1s_ref: (D_s, H)             static half of dense1 weight
    w1d_ref: (D_d, H)             dynamic half of dense1 weight
    b1_ref : (1, H)
    w2_ref : (H, C_pad)           dense2 weight, zero-padded to 128 lanes
    b2_ref : (1, C_pad)
    o_ref  : (TILE_B, T, C_pad)
    """
    # Static contribution: computed once per batch row, reused for every timestep.
    hs = jnp.dot(xs_ref[...], w1s_ref[...],
                 preferred_element_type=jnp.float32) + b1_ref[...]

    xd = xd_ref[...]            # (TILE_B, T, D_d) -- one whole-block load
    w1d = w1d_ref[...]
    w2 = w2_ref[...]
    b2 = b2_ref[...]

    # T is small and static -> unrolled 2-D matmuls (MXU-friendly, no 3-D dot lowering).
    for t in range(num_timesteps):
        hd = jnp.dot(xd[:, t, :], w1d, preferred_element_type=jnp.float32)
        h = jnp.maximum(hd + hs, 0.0)                          # ReLU, f32
        y = jnp.dot(h, w2, preferred_element_type=jnp.float32) + b2
        o_ref[:, t, :] = y.astype(o_ref.dtype)                 # lane-dense 128-wide store


def naive_model_forward(x_static, x_dynamic, params, *, tile_b=512):
    """Pallas implementation of NaiveModel.forward.

    x_static : (B, D_s) float32
    x_dynamic: (B, T, D_d) float32, with D_s + D_d == input_dim
    returns  : (B, T, num_classes) float32
    """
    w1, b1, w2, b2 = params["w1"], params["b1"], params["w2"], params["b2"]
    B, T, D_d = x_dynamic.shape
    D_s = x_static.shape[1]
    input_dim = D_s + D_d
    assert w1.shape[0] == input_dim, (w1.shape, input_dim)
    H = w1.shape[1]
    C = w2.shape[1]
    C_pad = ((C + _LANES - 1) // _LANES) * _LANES

    # Split dense1 weight so concat([x_s, x_d]) @ W1 == x_s @ W1s + x_d @ W1d.
    w1s = w1[:D_s, :].astype(jnp.float32)
    w1d = w1[D_s:, :].astype(jnp.float32)
    b1r = b1.reshape(1, H).astype(jnp.float32)

    # Pad dense2 weight/bias to a lane-dense (128-wide) output.
    w2p = jnp.zeros((H, C_pad), jnp.float32).at[:, :C].set(w2.astype(jnp.float32))
    b2p = jnp.zeros((1, C_pad), jnp.float32).at[:, :C].set(
        b2.reshape(1, C).astype(jnp.float32))

    # Batch tile: multiple of 8 (sublane alignment), capped so tiny demos still work.
    b_round8 = ((B + 7) // 8) * 8
    tb = max(8, min(int(tile_b), b_round8))
    tb = ((tb + 7) // 8) * 8
    B_pad = ((B + tb - 1) // tb) * tb

    if B_pad != B:
        xs = jnp.zeros((B_pad, D_s), jnp.float32).at[:B].set(x_static)
        xd = jnp.zeros((B_pad, T, D_d), jnp.float32).at[:B].set(x_dynamic)
    else:
        xs = x_static.astype(jnp.float32)
        xd = x_dynamic.astype(jnp.float32)

    grid = (B_pad // tb,)
    kernel = functools.partial(_mlp_kernel, num_timesteps=T)

    out = pl.pallas_call(
        kernel,
        out_shape=jax.ShapeDtypeStruct((B_pad, T, C_pad), jnp.float32),
        grid=grid,
        in_specs=[
            pl.BlockSpec((tb, D_s), lambda i: (i, 0)),        # x_static tile
            pl.BlockSpec((tb, T, D_d), lambda i: (i, 0, 0)),  # x_dynamic tile
            pl.BlockSpec((D_s, H), lambda i: (0, 0)),         # W1 static  (VMEM-resident)
            pl.BlockSpec((D_d, H), lambda i: (0, 0)),         # W1 dynamic (VMEM-resident)
            pl.BlockSpec((1, H), lambda i: (0, 0)),           # b1
            pl.BlockSpec((H, C_pad), lambda i: (0, 0)),       # W2 (padded)
            pl.BlockSpec((1, C_pad), lambda i: (0, 0)),       # b2 (padded)
        ],
        out_specs=pl.BlockSpec((tb, T, C_pad), lambda i: (i, 0, 0)),
        compiler_params=pltpu.CompilerParams(
            dimension_semantics=("parallel",),
        ),
    )(xs, xd, w1s, w1d, b1r, w2p, b2p)

    return out[:B, :, :C]


def init_params(key, input_dim, hidden=64, num_classes=15):
    """Deterministic synthetic init (nn.Linear shapes; weights stored (in, out))."""
    k1, k2, k3, k4 = jax.random.split(key, 4)
    bound1 = 1.0 / jnp.sqrt(input_dim)
    bound2 = 1.0 / jnp.sqrt(hidden)
    return {
        "w1": jax.random.uniform(k1, (input_dim, hidden), jnp.float32, -bound1, bound1),
        "b1": jax.random.uniform(k2, (1, hidden), jnp.float32, -bound1, bound1),
        "w2": jax.random.uniform(k3, (hidden, num_classes), jnp.float32, -bound2, bound2),
        "b2": jax.random.uniform(k4, (1, num_classes), jnp.float32, -bound2, bound2),
    }


if __name__ == "__main__":
    # Small shapes consistent with the module:
    # batch=2, timesteps=5, static feats=12, dynamic feats=20 -> input_dim=32, 15 classes
    B, T, D_s, D_d, C = 2, 5, 12, 20, 15
    input_dim = D_s + D_d

    key = jax.random.PRNGKey(0)
    k_s, k_d, k_p = jax.random.split(key, 3)
    x_static = jax.random.normal(k_s, (B, D_s), jnp.float32)
    x_dynamic = jax.random.normal(k_d, (B, T, D_d), jnp.float32)
    params = init_params(k_p, input_dim, hidden=64, num_classes=C)

    out = naive_model_forward(x_static, x_dynamic, params)
    out = jax.block_until_ready(out)

    # Pure-JAX reference (original repeat + concat formulation).
    x_rep = jnp.broadcast_to(x_static[:, None, :], (B, T, D_s))
    x_cat = jnp.concatenate([x_rep, x_dynamic], axis=2)
    ref = (jnp.maximum(x_cat @ params["w1"] + params["b1"][0], 0.0)
           @ params["w2"] + params["b2"][0])

    assert out.shape == (B, T, C), out.shape
    assert jnp.allclose(out, ref, atol=1e-4, rtol=1e-5), "mismatch vs reference"

    print("KERNEL_OK")
</pallas_src>

<mosaic_0001>
module attributes {stable_mosaic.version = 11 : i64} {
  func.func @_mlp_kernel(%arg0: i32, %arg1: memref<8x12xf32, #tpu.memory_space<vmem>>, %arg2: memref<8x5x20xf32, #tpu.memory_space<vmem>>, %arg3: memref<12x64xf32, #tpu.memory_space<vmem>>, %arg4: memref<20x64xf32, #tpu.memory_space<vmem>>, %arg5: memref<1x64xf32, #tpu.memory_space<vmem>>, %arg6: memref<64x128xf32, #tpu.memory_space<vmem>>, %arg7: memref<1x128xf32, #tpu.memory_space<vmem>>, %arg8: memref<8x5x128xf32, #tpu.memory_space<vmem>>) attributes {dimension_semantics = [#tpu.dimension_semantics<parallel>], iteration_bounds = array<i64: 1>, scalar_prefetch = 0 : i64, scratch_operands = 0 : i64, tpu.core_type = #tpu.core_type<tc>, window_params = [{transform_indices = @transform_0, window_bounds = array<i64: 8, 12>}, {transform_indices = @transform_1, window_bounds = array<i64: 8, 5, 20>}, {pipeline_mode = #tpu.pipeline_mode<synchronous>, transform_indices = @transform_2, window_bounds = array<i64: 12, 64>}, {pipeline_mode = #tpu.pipeline_mode<synchronous>, transform_indices = @transform_3, window_bounds = array<i64: 20, 64>}, {pipeline_mode = #tpu.pipeline_mode<synchronous>, transform_indices = @transform_4, window_bounds = array<i64: 1, 64>}, {pipeline_mode = #tpu.pipeline_mode<synchronous>, transform_indices = @transform_5, window_bounds = array<i64: 64, 128>}, {pipeline_mode = #tpu.pipeline_mode<synchronous>, transform_indices = @transform_6, window_bounds = array<i64: 1, 128>}, {transform_indices = @transform_7, window_bounds = array<i64: 8, 5, 128>}]} {
    %c0 = arith.constant 0 : index
    %c0_0 = arith.constant 0 : index
    %0 = vector.load %arg1[%c0, %c0_0] : memref<8x12xf32, #tpu.memory_space<vmem>>, vector<8x12xf32>
    %c0_1 = arith.constant 0 : index
    %c0_2 = arith.constant 0 : index
    %1 = vector.load %arg3[%c0_1, %c0_2] : memref<12x64xf32, #tpu.memory_space<vmem>>, vector<12x64xf32>
    %cst = arith.constant dense<0.000000e+00> : vector<8x64xf32>
    %2 = tpu.matmul %0, %1, %cst {dimension_numbers = #tpu.dot_dimension_numbers<[1], [0], [0], [1], [0, 0, 1, 1], [], []>} : vector<8x12xf32>, vector<12x64xf32>, vector<8x64xf32> -> vector<8x64xf32>
    %c0_3 = arith.constant 0 : index
    %c0_4 = arith.constant 0 : index
    %3 = vector.load %arg5[%c0_3, %c0_4] : memref<1x64xf32, #tpu.memory_space<vmem>>, vector<1x64xf32>
    %4 = vector.broadcast %3 : vector<1x64xf32> to vector<8x64xf32>
    %5 = arith.addf %2, %4 : vector<8x64xf32>
    %c0_5 = arith.constant 0 : index
    %c0_6 = arith.constant 0 : index
    %c0_7 = arith.constant 0 : index
    %6 = vector.load %arg2[%c0_5, %c0_6, %c0_7] : memref<8x5x20xf32, #tpu.memory_space<vmem>>, vector<8x5x20xf32>
    %c0_8 = arith.constant 0 : index
    %c0_9 = arith.constant 0 : index
    %7 = vector.load %arg4[%c0_8, %c0_9] : memref<20x64xf32, #tpu.memory_space<vmem>>, vector<20x64xf32>
    %c0_10 = arith.constant 0 : index
    %c0_11 = arith.constant 0 : index
    %8 = vector.load %arg6[%c0_10, %c0_11] : memref<64x128xf32, #tpu.memory_space<vmem>>, vector<64x128xf32>
    %c0_12 = arith.constant 0 : index
    %c0_13 = arith.constant 0 : index
    %9 = vector.load %arg7[%c0_12, %c0_13] : memref<1x128xf32, #tpu.memory_space<vmem>>, vector<1x128xf32>
    %10 = vector.extract_strided_slice %6 {offsets = [0, 0, 0], sizes = [8, 1, 20], strides = [1, 1, 1]} : vector<8x5x20xf32> to vector<8x1x20xf32>
    %11 = vector.shape_cast %10 : vector<8x1x20xf32> to vector<8x20xf32>
    %cst_14 = arith.constant dense<0.000000e+00> : vector<8x64xf32>
    %12 = tpu.matmul %11, %7, %cst_14 {dimension_numbers = #tpu.dot_dimension_numbers<[1], [0], [0], [1], [0, 0, 1, 1], [], []>} : vector<8x20xf32>, vector<20x64xf32>, vector<8x64xf32> -> vector<8x64xf32>
    %13 = arith.addf %12, %5 : vector<8x64xf32>
    %cst_15 = arith.constant 0.000000e+00 : f32
    %14 = vector.broadcast %cst_15 : f32 to vector<8x64xf32>
    %15 = arith.maximumf %13, %14 : vector<8x64xf32>
    %cst_16 = arith.constant dense<0.000000e+00> : vector<8x128xf32>
    %16 = tpu.matmul %15, %8, %cst_16 {dimension_numbers = #tpu.dot_dimension_numbers<[1], [0], [0], [1], [0, 0, 1, 1], [], []>} : vector<8x64xf32>, vector<64x128xf32>, vector<8x128xf32> -> vector<8x128xf32>
    %17 = vector.broadcast %9 : vector<1x128xf32> to vector<8x128xf32>
    %18 = arith.addf %16, %17 : vector<8x128xf32>
    %c0_17 = arith.constant 0 : index
    %c0_18 = arith.constant 0 : index
    %c0_19 = arith.constant 0 : index
    %19 = vector.load %arg8[%c0_17, %c0_18, %c0_19] : memref<8x5x128xf32, #tpu.memory_space<vmem>>, vector<8x1x128xf32>
    %20 = vector.shape_cast %19 : vector<8x1x128xf32> to vector<8x128xf32>
    %21 = vector.shape_cast %18 : vector<8x128xf32> to vector<8x1x128xf32>
    tpu.vector_store %arg8[%c0_17, %c0_18, %c0_19], %21 {strides = array<i32>} : memref<8x5x128xf32, #tpu.memory_space<vmem>>, vector<8x1x128xf32>,
    %22 = vector.extract_strided_slice %6 {offsets = [0, 1, 0], sizes = [8, 1, 20], strides = [1, 1, 1]} : vector<8x5x20xf32> to vector<8x1x20xf32>
    %23 = vector.shape_cast %22 : vector<8x1x20xf32> to vector<8x20xf32>
    %cst_20 = arith.constant dense<0.000000e+00> : vector<8x64xf32>
    %24 = tpu.matmul %23, %7, %cst_20 {dimension_numbers = #tpu.dot_dimension_numbers<[1], [0], [0], [1], [0, 0, 1, 1], [], []>} : vector<8x20xf32>, vector<20x64xf32>, vector<8x64xf32> -> vector<8x64xf32>
    %25 = arith.addf %24, %5 : vector<8x64xf32>
    %cst_21 = arith.constant 0.000000e+00 : f32
    %26 = vector.broadcast %cst_21 : f32 to vector<8x64xf32>
    %27 = arith.maximumf %25, %26 : vector<8x64xf32>
    %cst_22 = arith.constant dense<0.000000e+00> : vector<8x128xf32>
    %28 = tpu.matmul %27, %8, %cst_22 {dimension_numbers = #tpu.dot_dimension_numbers<[1], [0], [0], [1], [0, 0, 1, 1], [], []>} : vector<8x64xf32>, vector<64x128xf32>, vector<8x128xf32> -> vector<8x128xf32>
    %29 = vector.broadcast %9 : vector<1x128xf32> to vector<8x128xf32>
    %30 = arith.addf %28, %29 : vector<8x128xf32>
    %c0_23 = arith.constant 0 : index
    %c1 = arith.constant 1 : index
    %c0_24 = arith.constant 0 : index
    %31 = vector.load %arg8[%c0_23, %c1, %c0_24] : memref<8x5x128xf32, #tpu.memory_space<vmem>>, vector<8x1x128xf32>
    %32 = vector.shape_cast %31 : vector<8x1x128xf32> to vector<8x128xf32>
    %33 = vector.shape_cast %30 : vector<8x128xf32> to vector<8x1x128xf32>
    tpu.vector_store %arg8[%c0_23, %c1, %c0_24], %33 {strides = array<i32>} : memref<8x5x128xf32, #tpu.memory_space<vmem>>, vector<8x1x128xf32>,
    %34 = vector.extract_strided_slice %6 {offsets = [0, 2, 0], sizes = [8, 1, 20], strides = [1, 1, 1]} : vector<8x5x20xf32> to vector<8x1x20xf32>
    %35 = vector.shape_cast %34 : vector<8x1x20xf32> to vector<8x20xf32>
    %cst_25 = arith.constant dense<0.000000e+00> : vector<8x64xf32>
    %36 = tpu.matmul %35, %7, %cst_25 {dimension_numbers = #tpu.dot_dimension_numbers<[1], [0], [0], [1], [0, 0, 1, 1], [], []>} : vector<8x20xf32>, vector<20x64xf32>, vector<8x64xf32> -> vector<8x64xf32>
    %37 = arith.addf %36, %5 : vector<8x64xf32>
    %cst_26 = arith.constant 0.000000e+00 : f32
    %38 = vector.broadcast %cst_26 : f32 to vector<8x64xf32>
    %39 = arith.maximumf %37, %38 : vector<8x64xf32>
    %cst_27 = arith.constant dense<0.000000e+00> : vector<8x128xf32>
    %40 = tpu.matmul %39, %8, %cst_27 {dimension_numbers = #tpu.dot_dimension_numbers<[1], [0], [0], [1], [0, 0, 1, 1], [], []>} : vector<8x64xf32>, vector<64x128xf32>, vector<8x128xf32> -> vector<8x128xf32>
    %41 = vector.broadcast %9 : vector<1x128xf32> to vector<8x128xf32>
    %42 = arith.addf %40, %41 : vector<8x128xf32>
    %c0_28 = arith.constant 0 : index
    %c2 = arith.constant 2 : index
    %c0_29 = arith.constant 0 : index
    %43 = vector.load %arg8[%c0_28, %c2, %c0_29] : memref<8x5x128xf32, #tpu.memory_space<vmem>>, vector<8x1x128xf32>
    %44 = vector.shape_cast %43 : vector<8x1x128xf32> to vector<8x128xf32>
    %45 = vector.shape_cast %42 : vector<8x128xf32> to vector<8x1x128xf32>
    tpu.vector_store %arg8[%c0_28, %c2, %c0_29], %45 {strides = array<i32>} : memref<8x5x128xf32, #tpu.memory_space<vmem>>, vector<8x1x128xf32>,
    %46 = vector.extract_strided_slice %6 {offsets = [0, 3, 0], sizes = [8, 1, 20], strides = [1, 1, 1]} : vector<8x5x20xf32> to vector<8x1x20xf32>
    %47 = vector.shape_cast %46 : vector<8x1x20xf32> to vector<8x20xf32>
    %cst_30 = arith.constant dense<0.000000e+00> : vector<8x64xf32>
    %48 = tpu.matmul %47, %7, %cst_30 {dimension_numbers = #tpu.dot_dimension_numbers<[1], [0], [0], [1], [0, 0, 1, 1], [], []>} : vector<8x20xf32>, vector<20x64xf32>, vector<8x64xf32> -> vector<8x64xf32>
    %49 = arith.addf %48, %5 : vector<8x64xf32>
    %cst_31 = arith.constant 0.000000e+00 : f32
    %50 = vector.broadcast %cst_31 : f32 to vector<8x64xf32>
    %51 = arith.maximumf %49, %50 : vector<8x64xf32>
    %cst_32 = arith.constant dense<0.000000e+00> : vector<8x128xf32>
    %52 = tpu.matmul %51, %8, %cst_32 {dimension_numbers = #tpu.dot_dimension_numbers<[1], [0], [0], [1], [0, 0, 1, 1], [], []>} : vector<8x64xf32>, vector<64x128xf32>, vector<8x128xf32> -> vector<8x128xf32>
    %53 = vector.broadcast %9 : vector<1x128xf32> to vector<8x128xf32>
    %54 = arith.addf %52, %53 : vector<8x128xf32>
    %c0_33 = arith.constant 0 : index
    %c3 = arith.constant 3 : index
    %c0_34 = arith.constant 0 : index
    %55 = vector.load %arg8[%c0_33, %c3, %c0_34] : memref<8x5x128xf32, #tpu.memory_space<vmem>>, vector<8x1x128xf32>
    %56 = vector.shape_cast %55 : vector<8x1x128xf32> to vector<8x128xf32>
    %57 = vector.shape_cast %54 : vector<8x128xf32> to vector<8x1x128xf32>
    tpu.vector_store %arg8[%c0_33, %c3, %c0_34], %57 {strides = array<i32>} : memref<8x5x128xf32, #tpu.memory_space<vmem>>, vector<8x1x128xf32>,
    %58 = vector.extract_strided_slice %6 {offsets = [0, 4, 0], sizes = [8, 1, 20], strides = [1, 1, 1]} : vector<8x5x20xf32> to vector<8x1x20xf32>
    %59 = vector.shape_cast %58 : vector<8x1x20xf32> to vector<8x20xf32>
    %cst_35 = arith.constant dense<0.000000e+00> : vector<8x64xf32>
    %60 = tpu.matmul %59, %7, %cst_35 {dimension_numbers = #tpu.dot_dimension_numbers<[1], [0], [0], [1], [0, 0, 1, 1], [], []>} : vector<8x20xf32>, vector<20x64xf32>, vector<8x64xf32> -> vector<8x64xf32>
    %61 = arith.addf %60, %5 : vector<8x64xf32>
    %cst_36 = arith.constant 0.000000e+00 : f32
    %62 = vector.broadcast %cst_36 : f32 to vector<8x64xf32>
    %63 = arith.maximumf %61, %62 : vector<8x64xf32>
    %cst_37 = arith.constant dense<0.000000e+00> : vector<8x128xf32>
    %64 = tpu.matmul %63, %8, %cst_37 {dimension_numbers = #tpu.dot_dimension_numbers<[1], [0], [0], [1], [0, 0, 1, 1], [], []>} : vector<8x64xf32>, vector<64x128xf32>, vector<8x128xf32> -> vector<8x128xf32>
    %65 = vector.broadcast %9 : vector<1x128xf32> to vector<8x128xf32>
    %66 = arith.addf %64, %65 : vector<8x128xf32>
    %c0_38 = arith.constant 0 : index
    %c4 = arith.constant 4 : index
    %c0_39 = arith.constant 0 : index
    %67 = vector.load %arg8[%c0_38, %c4, %c0_39] : memref<8x5x128xf32, #tpu.memory_space<vmem>>, vector<8x1x128xf32>
    %68 = vector.shape_cast %67 : vector<8x1x128xf32> to vector<8x128xf32>
    %69 = vector.shape_cast %66 : vector<8x128xf32> to vector<8x1x128xf32>
    tpu.vector_store %arg8[%c0_38, %c4, %c0_39], %69 {strides = array<i32>} : memref<8x5x128xf32, #tpu.memory_space<vmem>>, vector<8x1x128xf32>,
    return
  }
  func.func @transform_0(%arg0: i32) -> (i32, i32) {
    %c0_i32 = arith.constant 0 : i32
    %c0_i32_0 = arith.constant 0 : i32
    return %arg0, %c0_i32 : i32, i32
  }
  func.func @transform_1(%arg0: i32) -> (i32, i32, i32) {
    %c0_i32 = arith.constant 0 : i32
    %c0_i32_0 = arith.constant 0 : i32
    %c0_i32_1 = arith.constant 0 : i32
    return %arg0, %c0_i32, %c0_i32_0 : i32, i32, i32
  }
  func.func @transform_2(%arg0: i32) -> (i32, i32) {
    %c0_i32 = arith.constant 0 : i32
    %c0_i32_0 = arith.constant 0 : i32
    %c0_i32_1 = arith.constant 0 : i32
    return %c0_i32, %c0_i32_0 : i32, i32
  }
  func.func @transform_3(%arg0: i32) -> (i32, i32) {
    %c0_i32 = arith.constant 0 : i32
    %c0_i32_0 = arith.constant 0 : i32
    %c0_i32_1 = arith.constant 0 : i32
    return %c0_i32, %c0_i32_0 : i32, i32
  }
  func.func @transform_4(%arg0: i32) -> (i32, i32) {
    %c0_i32 = arith.constant 0 : i32
    %c0_i32_0 = arith.constant 0 : i32
    %c0_i32_1 = arith.constant 0 : i32
    return %c0_i32, %c0_i32_0 : i32, i32
  }
  func.func @transform_5(%arg0: i32) -> (i32, i32) {
    %c0_i32 = arith.constant 0 : i32
    %c0_i32_0 = arith.constant 0 : i32
    %c0_i32_1 = arith.constant 0 : i32
    return %c0_i32, %c0_i32_0 : i32, i32
  }
  func.func @transform_6(%arg0: i32) -> (i32, i32) {
    %c0_i32 = arith.constant 0 : i32
    %c0_i32_0 = arith.constant 0 : i32
    %c0_i32_1 = arith.constant 0 : i32
    return %c0_i32, %c0_i32_0 : i32, i32
  }
  func.func @transform_7(%arg0: i32) -> (i32, i32, i32) {
    %c0_i32 = arith.constant 0 : i32
    %c0_i32_0 = arith.constant 0 : i32
    %c0_i32_1 = arith.constant 0 : i32
    return %arg0, %c0_i32, %c0_i32_0 : i32, i32, i32
  }
}

</mosaic_0001>

<bundles_post_ra>
// kernel: tpu_custom_call.1
= control target key start
LH: loop header
LB: loop body
LE: loop exit
PB: predicated region body
PF: predicated region fallthrough
CT: control target
= control target key end

     0   :  { %vm40_vm0 = vcmask 1043456   ;;  %v1632_v0 = vmov 0.0|0.0   ;;  %vm1633_vm1 = vmmov 1   ;;  %vm1634_vm3 = vmmov 0   ;;  %s2118_s3 = inlined_call_operand.vmem [shape: f32[20,64], index: 3, kind: input, shape index: {}]   ;;  %s2119_s2 = inlined_call_operand.vmem [shape: f32[12,64], index: 2, kind: input, shape index: {}]   ;;  %s2120_s0 = inlined_call_operand.vmem [shape: f32[8,12], index: 0, kind: input, shape index: {}]   ;;  %s2121_s1 = inlined_call_operand.vmem [shape: f32[8,5,20], index: 1, kind: input, shape index: {}]   ;;  %s2122_s5 = inlined_call_operand.vmem [shape: f32[64,128], index: 5, kind: input, shape index: {}]   ;;  %s2123_s4 = inlined_call_operand.vmem [shape: f32[1,64], index: 4, kind: input, shape index: {}]   ;;  %s2124_s6 = inlined_call_operand.vmem [shape: f32[1,128], index: 6, kind: input, shape index: {}]   ;;  %s2125_s7 = inlined_call_operand.vmem [shape: f32[8,5,128], index: 7, kind: output, shape index: {}]  }
   0x1   :  { %1552 = vmatprep.subr.bf16.mxu1 %v1632_v0  ;;  %1548 = vmatprep.subr.bf16.mxu0 %v1632_v0  ;;  %v122_v1 = vld [vmem:[%s2118_s3] sm:$0xff]  ;;  %v123_v2 = vld [vmem:[%s2118_s3 + $0x8] sm:$0xff]  ;;  %vm1550_vm2 = vmpackc.low %vm40_vm0, %vm1633_vm1  ;;  %v1635_v6 = vmov 0.0   ;;  %vm36_vm4 = vcmask 97280   ;;  %vm143_vm5 = vcmask 1041409   ;;  %vm146_vm6 = vcmask 1042434  }
   0x2   :  { %v27_v3 = vld [vmem:[%s2119_s2] sm:$0xff]  ;;  %v1688_v4 = vpack.c.bf16 %v123_v2, %v122_v1  ;;  %v28_v5 = vld [vmem:[%s2119_s2 + $0x8] sm:$0xf]  ;;  %1405 = vmatprep.mubr.msk.f32.mxu0 %vm1634_vm3, %v1635_v6  ;;  %1414 = vmatprep.mubr.msk.f32.mxu1 %vm1634_vm3, %v1635_v6  ;;  %v1704_v9 = vld [vmem:[%s2118_s3 + $0x10] sm:$0xf]  ;;  %vm149_vm7 = vcmask 1043459  }
   0x3   :  { %v1549_v7 = vpack.c.bf16 %v28_v5, %v27_v3  ;;  %v26_v8 = vld [vmem:[%s2120_s0] sm:$0xff]  ;;  %v1709_v10 = vld [vmem:[%s2121_s1 + $0x8] sm:$0x1f]  ;;  %v1715_v11 = vld [vmem:[%s2121_s1 + $0x10] sm:$0x1f]  ;;  %vm152_vm8 = vcmask 1044484  }
   0x4   :  { %1554 = vmatpush3.bf16.msra.mxu1 %v1688_v4  ;;  %v1720_v12 = vld [vmem:[%s2121_s1 + $0x18] sm:$0x1f]  ;;  %v1725_v13 = vld [vmem:[%s2121_s1 + $0x20] sm:$0x1f]  ;;  %v1736_v15 = vld [vmem:[%s2121_s1 + $0x28] sm:$0x1f] }
   0x5   :  { %1551 = vmatpush3.bf16.msk.msra.mxu0 %vm1550_vm2, %v1549_v7  ;;  %1412 = vmatprep.subr.mxu1 %v1635_v6  ;;  %v1731_v14 = vld [vmem:[%s2121_s1] sm:$0x1f]  ;;  %v1741_v16 = vld [vmem:[%s2121_s1 + $0x30] sm:$0x1f]  ;;  %v142_v17 = vrot.slane %v1709_v10, 7  ;;  %v145_v18 = vrot.slane %v1715_v11, 6 }
   0x6   :  { %v148_v19 = vrot.slane %v1720_v12, 5  ;;  %1555 = vmatprep.subr.bf16.mxu0 %v1632_v0  ;;  %v1750_v20 = vld [vmem:[%s2121_s1 + $0x38] sm:$0x1f]  ;;  %v151_v21 = vrot.slane %v1725_v13, 4  ;;  %v154_v22 = vrot.slane %v1736_v15, 3  ;;  %vm155_vm9 = vcmask 1045509  }
   0x7   :  { %v144_v23 = vsel %vm143_vm5, %v142_v17, %v1731_v14  ;;  %v157_v24 = vrot.slane %v1741_v16, 2  ;;  %vm158_vm10 = vcmask 1046534   ;;  %v125_v25 = vld [vmem:[%s2122_s5] sm:$0xff]  ;;  %v126_v26 = vld [vmem:[%s2122_s5 + $0x8] sm:$0xff]  ;;  %v386_v28 = vrot.slane %v1731_v14, 1  ;;  %v127_v34 = vld [vmem:[%s2122_s5 + $0x10] sm:$0xff] }
   0x8   :  { %1406 = vmatmul.mubr.msk.f32.vlgmr.msra.gmra.mrb[0].mxu0 %vm36_vm4, %v26_v8  ;;  %1413 = vmatpush3.msk.msra.mxu1 %vm40_vm0, %v1704_v9  ;;  %v147_v27 = vsel %vm146_vm6, %v145_v18, %v144_v23  ;;  %v388_v29 = vrot.slane %v1715_v11, 7  ;;  %v390_v30 = vrot.slane %v1720_v12, 6  ;;  %v160_v32 = vrot.slane %v1750_v20, 1  ;;  %v128_v35 = vld [vmem:[%s2122_s5 + $0x18] sm:$0xff]  ;;  %v129_v52 = vld [vmem:[%s2122_s5 + $0x20] sm:$0xff]  ;;  %v130_v53 = vld [vmem:[%s2122_s5 + $0x28] sm:$0xff] }
   0x9   :  { %1567 = vmatprep.subr.bf16.mxu1 %v1632_v0  ;;  %1433 = vmatprep.mubr.msk.f32.mxu0 %vm1634_vm3, %v1635_v6  ;;  %v150_v31 = vsel %vm149_vm7, %v148_v19, %v147_v27  ;;  %vm161_vm11 = vcmask 1047559   ;;  %v392_v33 = vrot.slane %v1725_v13, 5  ;;  %v387_v37 = vsel %vm143_vm5, %v1709_v10, %v386_v28  ;;  %v131_v55 = vld [vmem:[%s2122_s5 + $0x30] sm:$0xff]  ;;  %v132_v56 = vld [vmem:[%s2122_s5 + $0x38] sm:$0xff]  ;;  %v1294_v61 = vld [vmem:[%s2123_s4] ss:$0 sm:$0xff] }
   0xa   :  { %v153_v36 = vsel %vm152_vm8, %v151_v21, %v150_v31  ;;  %v394_v38 = vrot.slane %v1736_v15, 4  ;;  %v1786_v39 = vpack.c.bf16 %v126_v26, %v125_v25  ;;  %vm163_vm12 = vcmask 162816  }
   0xb   :  { %v156_v40 = vsel %vm155_vm9, %v154_v22, %v153_v36  ;;  %v389_v41 = vsel %vm146_vm6, %v388_v29, %v387_v37  ;;  %v396_v42 = vrot.slane %v1741_v16, 3  ;;  %v1794_v45 = vpack.c.bf16 %v128_v35, %v127_v34 }
   0xc   :  { %v159_v43 = vsel %vm158_vm10, %v157_v24, %v156_v40  ;;  %v391_v44 = vsel %vm149_vm7, %v390_v30, %v389_v41  ;;  %1557 = vmatpush3.bf16.msra.mxu0 %v1786_v39  ;;  %v398_v48 = vrot.slane %v1750_v20, 2  ;;  %v1826_v54 = vpack.c.bf16 %v130_v53, %v129_v52 }
   0xd   :  { %v162_v46 = vsel %vm161_vm11, %v160_v32, %v159_v43  ;;  %v393_v47 = vsel %vm152_vm8, %v392_v33, %v391_v44  ;;  %1558 = vmatprep.subr.bf16.mxu0 %v1632_v0  ;;  %v1838_v57 = vpack.c.bf16 %v132_v56, %v131_v55  ;;  %v612_v58 = vrot.slane %v1731_v14, 2  ;;  %v1923_v56 = vld [vmem:[%s2124_s6] ss:$0 sm:$0xff] }
   0xe   :  { %1415 = vmatmul.mubr.msk.f32.vlgmr.msra.gmra.mrb[0].mxu1 %vm163_vm12, %v162_v46  ;;  %v395_v49 = vsel %vm155_vm9, %v394_v38, %v393_v47  ;;  %v613_v59 = vrot.slane %v1709_v10, 1  ;;  %v616_v2 = vrot.slane %v1720_v12, 7  ;;  %v838_v3 = vrot.slane %v1731_v14, 3 }
   0xf   :  { %1569 = vmatpush3.bf16.msra.mxu1 %v1688_v4  ;;  %1442 = vmatprep.mubr.msk.f32.mxu1 %vm1634_vm3, %v1635_v6  ;;  %v397_v50 = vsel %vm158_vm10, %v396_v42, %v395_v49  ;;  %v839_v5 = vrot.slane %v1709_v10, 2  ;;  %v618_v19 = vrot.slane %v1725_v13, 6  ;;  %v841_v21 = vrot.slane %v1715_v11, 1 }
  0x10   :  { %1440 = vmatprep.subr.mxu1 %v1635_v6  ;;  %1560 = vmatpush3.bf16.msra.mxu0 %v1794_v45  ;;  %v399_v51 = vsel %vm161_vm11, %v398_v48, %v397_v50  ;;  %v614_v63 = vsel %vm143_vm5, %v613_v59, %v612_v58  ;;  %vm246_vm13 = vcmask 523264   ;;  %v620_v25 = vrot.slane %v1736_v15, 5 }
  0x11   :  { %1561 = vmatprep.subr.bf16.mxu0 %v1632_v0  ;;  %v615_v7 = vsel %vm146_vm6, %v1715_v11, %v614_v63  ;;  %v840_v23 = vsel %vm143_vm5, %v839_v5, %v838_v3  ;;  %v622_v31 = vrot.slane %v1741_v16, 4  ;;  %v844_v32 = vrot.slane %v1725_v13, 7 }
  0x12   :  { %v617_v22 = vsel %vm149_vm7, %v616_v2, %v615_v7  ;;  %v842_v27 = vsel %vm146_vm6, %v841_v21, %v840_v23  ;;  %v624_v36 = vrot.slane %v1750_v20, 3  ;;  %v846_v37 = vrot.slane %v1736_v15, 6 }
  0x13   :  { %1441 = vmatpush3.msk.msra.mxu1 %vm40_vm0, %v1704_v9  ;;  %v619_v26 = vsel %vm152_vm8, %v618_v19, %v617_v22  ;;  %v843_v34 = vsel %vm149_vm7, %v1720_v12, %v842_v27  ;;  %v848_v41 = vrot.slane %v1741_v16, 5  ;;  %v850_v44 = vrot.slane %v1750_v20, 4 }
  0x14   :  { %1443 = vmatmul.mubr.msk.f32.vlgmr.msra.gmra.mrb[2].mxu1 %vm163_vm12, %v399_v51  ;;  %1570 = vmatprep.subr.bf16.mxu1 %v1632_v0  ;;  %v621_v33 = vsel %vm155_vm9, %v620_v25, %v619_v26  ;;  %v845_v40 = vsel %vm152_vm8, %v844_v32, %v843_v34  ;;  %v1636_v48 = vmov 1966171168   ;;  %v325_v50 = vlaneseq }
  0x15   :  { %1572 = vmatpush3.bf16.msra.mxu1 %v1786_v39  ;;  %1461 = vmatprep.mubr.msk.f32.mxu1 %vm1634_vm3, %v1635_v6  ;;  %v623_v38 = vsel %vm158_vm10, %v622_v31, %v621_v33  ;;  %v847_v43 = vsel %vm155_vm9, %v846_v37, %v845_v40  ;;  %v323_v49 = vunpack.c.l.s4 %v1636_v48  ;;  %v1064_v53 = vrot.slane %v1731_v14, 4 }
  0x16   :  { %1573 = vmatprep.subr.bf16.mxu1 %v1632_v0  ;;  %1563 = vmatpush3.bf16.msra.mxu0 %v1826_v54  ;;  %v625_v42 = vsel %vm161_vm11, %v624_v36, %v623_v38  ;;  %v849_v46 = vsel %vm158_vm10, %v848_v41, %v847_v43  ;;  %v326_v52 = vshrl.u32 %v325_v50, 7  ;;  %v1065_v55 = vrot.slane %v1709_v10, 3 }
  0x17   :  { %1564 = vmatprep.subr.bf16.mxu0 %v1632_v0  ;;  %v851_v47 = vsel %vm161_vm11, %v850_v44, %v849_v46  ;;  %v324_v51 = vunpack.c.0.s8 %v323_v49  ;;  %v1067_v59 = vrot.slane %v1715_v11, 2  ;;  %v1069_v2 = vrot.slane %v1720_v12, 1 }
  0x18   :  { %v1072_v27 = vrot.slane %v1736_v15, 7  ;;  %v1074_v37 = vrot.slane %v1741_v16, 6  ;;  %v1076_v16 = vrot.slane %v1750_v20, 5 }
  0x19   :  { %1575 = vmatpush3.bf16.msra.mxu1 %v1794_v45  ;;  %v1925_v58 = vsub.s32 %v324_v51, %v326_v52 }
  0x1a   :  { %1576 = vmatprep.subr.bf16.mxu1 %v1632_v0  ;;  %1566 = vmatpush3.bf16.msra.mxu0 %v1838_v57 }
  0x1b   :  { %1585 = vmatprep.subr.bf16.mxu0 %v1632_v0 }
  0x1d   :  { %1578 = vmatpush3.bf16.msra.mxu1 %v1826_v54 }
  0x1e   :  { %1579 = vmatprep.subr.bf16.mxu1 %v1632_v0 }
  0x21   :  { %1581 = vmatpush3.bf16.msra.mxu1 %v1838_v57 }
  0x22   :  { %1582 = vmatprep.subr.bf16.mxu1 %v1632_v0 }
  0xdb   :  { %v110_v60 = vpop.f32.mrb[0].mxu0 }
  0xdc   :  { %v1407_v62 = vpop.f32.mrb[1].mxu0  ;;  %v1850_v1 = vadd.f32 %v1294_v61, %v110_v60  ;;  %v1066_v61 = vsel %vm143_vm5, %v1065_v55, %v1064_v53 }
  0xdd   :  { %v1068_v3 = vsel %vm146_vm6, %v1067_v59, %v1066_v61 }
  0xe1   :  { %v235_v8 = vpop.f32.mrb[0].mxu1 }
  0xe2   :  { %v236_v17 = vadd.f32 %v235_v8, %v1850_v1  ;;  %v1416_v18 = vpop.f32.mrb[1].mxu1 }
  0xe4   :  { %v239_v24 = vmax.f32 %v236_v17, 0.0  ;;  %v1070_v17 = vsel %vm149_vm7, %v1069_v2, %v1068_v3 }
  0xe6   :  { %1434 = vmatmul.mubr.msk.f32.vlgmr.msra.gmra.mrb[2].mxu0 %vm246_vm13, %v239_v24 }
  0xe7   :  { %v468_v28 = vpop.f32.mrb[2].mxu1  ;;  %1587 = vmatpush3.bf16.msra.mxu0 %v1786_v39  ;;  %1489 = vmatprep.mubr.msk.f32.mxu0 %vm1634_vm3, %v1635_v6 }
  0xe8   :  { %v469_v29 = vadd.f32 %v468_v28, %v1850_v1  ;;  %v1444_v30 = vpop.f32.mrb[3].mxu1  ;;  %1588 = vmatprep.subr.bf16.mxu0 %v1632_v0 }
  0xe9   :  { %v1071_v30 = vsel %vm152_vm8, %v1725_v13, %v1070_v17 }
  0xea   :  { %v472_v35 = vmax.f32 %v469_v29, 0.0  ;;  %v1073_v36 = vsel %vm155_vm9, %v1072_v27, %v1071_v30 }
  0xeb   :  { %1590 = vmatpush3.bf16.msra.mxu0 %v1794_v45  ;;  %v1075_v48 = vsel %vm158_vm10, %v1074_v37, %v1073_v36 }
  0xec   :  { %1462 = vmatmul.mubr.msk.f32.vlgmr.msra.gmra.mrb[4].mxu1 %vm246_vm13, %v472_v35  ;;  %1591 = vmatprep.subr.bf16.mxu0 %v1632_v0  ;;  %v1077_v52 = vsel %vm161_vm11, %v1076_v16, %v1075_v48 }
  0xed   :  { %1584 = vmatpush3.bf16.msra.mxu1 %v1688_v4  ;;  %1470 = vmatprep.mubr.msk.f32.mxu1 %vm1634_vm3, %v1635_v6 }
  0xee   :  { %1468 = vmatprep.subr.mxu1 %v1635_v6 }
  0xef   :  { %1593 = vmatpush3.bf16.msra.mxu0 %v1826_v54 }
  0xf0   :  { %1594 = vmatprep.subr.bf16.mxu0 %v1632_v0 }
  0xf1   :  { %1469 = vmatpush3.msk.msra.mxu1 %vm40_vm0, %v1704_v9 }
  0xf2   :  { %1471 = vmatmul.mubr.msk.f32.vlgmr.msra.gmra.mrb[6].mxu1 %vm163_vm12, %v625_v42  ;;  %1597 = vmatprep.subr.bf16.mxu1 %v1632_v0 }
  0xf3   :  { %1599 = vmatpush3.bf16.msra.mxu1 %v1688_v4  ;;  %1498 = vmatprep.mubr.msk.f32.mxu1 %vm1634_vm3, %v1635_v6 }
  0xf4   :  { %1496 = vmatprep.subr.mxu1 %v1635_v6  ;;  %1596 = vmatpush3.bf16.msra.mxu0 %v1838_v57 }
  0xf5   :  { %1612 = vmatprep.subr.bf16.mxu0 %v1632_v0 }
  0xf7   :  { %1497 = vmatpush3.msk.msra.mxu1 %vm40_vm0, %v1704_v9 }
  0xf8   :  { %1499 = vmatmul.mubr.msk.f32.vlgmr.msra.gmra.mrb[8].mxu1 %vm163_vm12, %v851_v47  ;;  %1600 = vmatprep.subr.bf16.mxu1 %v1632_v0 }
  0xf9   :  { %1602 = vmatpush3.bf16.msra.mxu1 %v1786_v39  ;;  %1517 = vmatprep.mubr.msk.f32.mxu1 %vm1634_vm3, %v1635_v6 }
  0xfa   :  { %1603 = vmatprep.subr.bf16.mxu1 %v1632_v0 }
  0xfd   :  { %1605 = vmatpush3.bf16.msra.mxu1 %v1794_v45 }
  0xfe   :  { %1606 = vmatprep.subr.bf16.mxu1 %v1632_v0 }
 0x101   :  { %1608 = vmatpush3.bf16.msra.mxu1 %v1826_v54 }
 0x102   :  { %1609 = vmatprep.subr.bf16.mxu1 %v1632_v0 }
 0x105   :  { %1611 = vmatpush3.bf16.msra.mxu1 %v1838_v57 }
 0x1b9   :  { %v316_v60 = vpop.f32.mrb[2].mxu0 }
 0x1ba   :  { %v317_v62 = vadd.f32 %v1923_v56, %v316_v60  ;;  %v1435_v63 = vpop.f32.mrb[3].mxu0 }
 0x1bc   :  { %v321_v14 = vcombine.high %v317_v62, %v317_v62  ;;  %v328_v10 = vrot.slane %v317_v62, %v1925_v58 }
 0x1be   :  { %v335_v5 = vrot.slane %v321_v14, %v1925_v58  ;;  %v336_v7 = vcombine.high %v328_v10, %v328_v10  ;;  %v344_v8 = vrot.slane %v328_v10, %v1925_v58  ;;  %1301 = vst.sshfl [vmem:[%s2125_s7] sm:$0x1 pattern:$0x73625140] %v328_v10 }
 0x1bf   :  { %v542_v11 = vpop.f32.mrb[4].mxu1 }
 0x1c0   :  { %v337_v18 = vcombine.high %v335_v5, %v335_v5  ;;  %v351_v12 = vrot.slane %v335_v5, %v1925_v58  ;;  %v358_v19 = vrot.slane %v336_v7, %v1925_v58  ;;  %v366_v21 = vcombine.high %v344_v8, %v344_v8  ;;  %1302 = vst.sshfl [vmem:[%s2125_s7 + $0x8] sm:$0x1 pattern:$0x73625140] %v336_v7  ;;  %v1463_v22 = vpop.f32.mrb[5].mxu1 }
 0x1c1   :  { %1303 = vst.sshfl [vmem:[%s2125_s7 + $0x20] sm:$0x1 pattern:$0x73625140] %v335_v5  ;;  %v543_v23 = vadd.f32 %v1923_v56, %v542_v11 }
 0x1c2   :  { %v365_v24 = vrot.slane %v337_v18, %v1925_v58  ;;  %v367_v25 = vcombine.high %v351_v12, %v351_v12  ;;  %v368_v26 = vcombine.high %v358_v19, %v358_v19  ;;  %380 = vst [vmem:[%s2125_s7 + $0x10] sm:$0x1] %v366_v21  ;;  %1304 = vst.sshfl [vmem:[%s2125_s7 + $0x28] sm:$0x1 pattern:$0x73625140] %v337_v18 }
 0x1c3   :  { %v547_v28 = vcombine.high %v543_v23, %v543_v23  ;;  %v554_v29 = vrot.slane %v543_v23, %v1925_v58 }
 0x1c4   :  { %v369_v31 = vcombine.high %v365_v24, %v365_v24  ;;  %381 = vst [vmem:[%s2125_s7 + $0x18] sm:$0x1] %v368_v26  ;;  %384 = vst [vmem:[%s2125_s7 + $0x30] sm:$0x1] %v367_v25 }
 0x1c5   :  { %v561_v32 = vrot.slane %v547_v28, %v1925_v58  ;;  %v562_v33 = vcombine.high %v554_v29, %v554_v29  ;;  %v570_v15 = vrot.slane %v554_v29, %v1925_v58  ;;  %1308 = vst.sshfl [vmem:[%s2125_s7 + $0x1] sm:$0x1 pattern:$0x73625140] %v554_v29  ;;  %v694_v34 = vpop.f32.mrb[6].mxu1 }
 0x1c6   :  { %385 = vst [vmem:[%s2125_s7 + $0x38] sm:$0x1] %v369_v31  ;;  %v695_v13 = vadd.f32 %v694_v34, %v1850_v1  ;;  %v1472_v35 = vpop.f32.mrb[7].mxu1 }
 0x1c7   :  { %v563_v38 = vcombine.high %v561_v32, %v561_v32  ;;  %v577_v40 = vrot.slane %v561_v32, %v1925_v58  ;;  %v584_v41 = vrot.slane %v562_v33, %v1925_v58  ;;  %v592_v42 = vcombine.high %v570_v15, %v570_v15  ;;  %1309 = vst.sshfl [vmem:[%s2125_s7 + $0x9] sm:$0x1 pattern:$0x73625140] %v562_v33 }
 0x1c8   :  { %1310 = vst.sshfl [vmem:[%s2125_s7 + $0x21] sm:$0x1 pattern:$0x73625140] %v561_v32  ;;  %v698_v43 = vmax.f32 %v695_v13, 0.0 }
 0x1c9   :  { %v591_v44 = vrot.slane %v563_v38, %v1925_v58  ;;  %v593_v46 = vcombine.high %v577_v40, %v577_v40  ;;  %v594_v47 = vcombine.high %v584_v41, %v584_v41  ;;  %606 = vst [vmem:[%s2125_s7 + $0x11] sm:$0x1] %v592_v42  ;;  %1311 = vst.sshfl [vmem:[%s2125_s7 + $0x29] sm:$0x1 pattern:$0x73625140] %v563_v38 }
 0x1ca   :  { %1490 = vmatmul.mubr.msk.f32.vlgmr.msra.gmra.mrb[4].mxu0 %vm246_vm13, %v698_v43 }
 0x1cb   :  { %v595_v49 = vcombine.high %v591_v44, %v591_v44  ;;  %607 = vst [vmem:[%s2125_s7 + $0x19] sm:$0x1] %v594_v47  ;;  %610 = vst [vmem:[%s2125_s7 + $0x31] sm:$0x1] %v593_v46  ;;  %1614 = vmatpush3.bf16.msra.mxu0 %v1688_v4  ;;  %v920_v50 = vpop.f32.mrb[8].mxu1  ;;  %1526 = vmatprep.mubr.msk.f32.mxu0 %vm1634_vm3, %v1635_v6 }
 0x1cc   :  { %v921_v20 = vadd.f32 %v920_v50, %v1850_v1  ;;  %1524 = vmatprep.subr.mxu0 %v1635_v6  ;;  %v1500_v51 = vpop.f32.mrb[9].mxu1 }
 0x1cd   :  { %611 = vst [vmem:[%s2125_s7 + $0x39] sm:$0x1] %v595_v49 }
 0x1ce   :  { %v924_v53 = vmax.f32 %v921_v20, 0.0 }
 0x1cf   :  { %1525 = vmatpush3.msk.msra.mxu0 %vm40_vm0, %v1704_v9 }
 0x1d0   :  { %1527 = vmatmul.mubr.msk.f32.vlgmr.msra.gmra.mrb[6].mxu0 %vm163_vm12, %v1077_v52  ;;  %1518 = vmatmul.mubr.msk.f32.vlgmr.msra.gmra.mrb[10].mxu1 %vm246_vm13, %v924_v53 }
 0x1d1   :  { %1615 = vmatprep.subr.bf16.mxu0 %v1632_v0  ;;  %1545 = vmatprep.mubr.msk.f32.mxu0 %vm1634_vm3, %v1635_v6 }
 0x1d2   :  { %1617 = vmatpush3.bf16.msra.mxu0 %v1786_v39 }
 0x1d3   :  { %1618 = vmatprep.subr.bf16.mxu0 %v1632_v0 }
 0x1d6   :  { %1620 = vmatpush3.bf16.msra.mxu0 %v1794_v45 }
 0x1d7   :  { %1621 = vmatprep.subr.bf16.mxu0 %v1632_v0 }
 0x1da   :  { %1623 = vmatpush3.bf16.msra.mxu0 %v1826_v54 }
 0x1db   :  { %1624 = vmatprep.subr.bf16.mxu0 %v1632_v0 }
 0x1de   :  { %1626 = vmatpush3.bf16.msra.mxu0 %v1838_v57 }
 0x29d   :  { %v768_v4 = vpop.f32.mrb[4].mxu0 }
 0x29e   :  { %v769_v9 = vadd.f32 %v1923_v56, %v768_v4  ;;  %v1491_v55 = vpop.f32.mrb[5].mxu0 }
 0x2a0   :  { %v773_v59 = vcombine.high %v769_v9, %v769_v9  ;;  %v780_v6 = vrot.slane %v769_v9, %v1925_v58 }
 0x2a2   :  { %v787_v39 = vrot.slane %v773_v59, %v1925_v58  ;;  %v788_v60 = vcombine.high %v780_v6, %v780_v6  ;;  %v796_v45 = vrot.slane %v780_v6, %v1925_v58  ;;  %1315 = vst.sshfl [vmem:[%s2125_s7 + $0x2] sm:$0x1 pattern:$0x73625140] %v780_v6 }
 0x2a3   :  { %v1146_v54 = vpop.f32.mrb[6].mxu0  ;;  %v994_v0 = vpop.f32.mrb[10].mxu1 }
 0x2a4   :  { %v789_v61 = vcombine.high %v787_v39, %v787_v39  ;;  %v803_v57 = vrot.slane %v787_v39, %v1925_v58  ;;  %v810_v62 = vrot.slane %v788_v60, %v1925_v58  ;;  %v818_v63 = vcombine.high %v796_v45, %v796_v45  ;;  %1316 = vst.sshfl [vmem:[%s2125_s7 + $0xa] sm:$0x1 pattern:$0x73625140] %v788_v60  ;;  %v1528_v2 = vpop.f32.mrb[7].mxu0  ;;  %v1519_v14 = vpop.f32.mrb[11].mxu1 }
 0x2a5   :  { %1317 = vst.sshfl [vmem:[%s2125_s7 + $0x22] sm:$0x1 pattern:$0x73625140] %v787_v39  ;;  %v1147_v10 = vadd.f32 %v1146_v54, %v1850_v1  ;;  %v995_v3 = vadd.f32 %v1923_v56, %v994_v0 }
 0x2a6   :  { %v817_v5 = vrot.slane %v789_v61, %v1925_v58  ;;  %v819_v7 = vcombine.high %v803_v57, %v803_v57  ;;  %v820_v8 = vcombine.high %v810_v62, %v810_v62  ;;  %832 = vst [vmem:[%s2125_s7 + $0x12] sm:$0x1] %v818_v63  ;;  %1318 = vst.sshfl [vmem:[%s2125_s7 + $0x2a] sm:$0x1 pattern:$0x73625140] %v789_v61 }
 0x2a7   :  { %v1150_v11 = vmax.f32 %v1147_v10, 0.0  ;;  %v999_v17 = vcombine.high %v995_v3, %v995_v3  ;;  %v1006_v18 = vrot.slane %v995_v3, %v1925_v58 }
 0x2a8   :  { %v821_v12 = vcombine.high %v817_v5, %v817_v5  ;;  %833 = vst [vmem:[%s2125_s7 + $0x1a] sm:$0x1] %v820_v8  ;;  %836 = vst [vmem:[%s2125_s7 + $0x32] sm:$0x1] %v819_v7 }
 0x2a9   :  { %v1013_v1 = vrot.slane %v999_v17, %v1925_v58  ;;  %v1014_v19 = vcombine.high %v1006_v18, %v1006_v18  ;;  %v1022_v21 = vrot.slane %v1006_v18, %v1925_v58  ;;  %1322 = vst.sshfl [vmem:[%s2125_s7 + $0x3] sm:$0x1 pattern:$0x73625140] %v1006_v18  ;;  %1546 = vmatmul.mubr.msk.f32.vlgmr.msra.gmra.mrb[8].mxu0 %vm246_vm13, %v1150_v11 }
 0x2aa   :  { %837 = vst [vmem:[%s2125_s7 + $0x3a] sm:$0x1] %v821_v12 }
 0x2ab   :  { %v1015_v22 = vcombine.high %v1013_v1, %v1013_v1  ;;  %v1029_v23 = vrot.slane %v1013_v1, %v1925_v58  ;;  %v1036_v24 = vrot.slane %v1014_v19, %v1925_v58  ;;  %v1044_v25 = vcombine.high %v1022_v21, %v1022_v21  ;;  %1323 = vst.sshfl [vmem:[%s2125_s7 + $0xb] sm:$0x1 pattern:$0x73625140] %v1014_v19 }
 0x2ac   :  { %1324 = vst.sshfl [vmem:[%s2125_s7 + $0x23] sm:$0x1 pattern:$0x73625140] %v1013_v1 }
 0x2ad   :  { %v1043_v26 = vrot.slane %v1015_v22, %v1925_v58  ;;  %v1045_v27 = vcombine.high %v1029_v23, %v1029_v23  ;;  %v1046_v28 = vcombine.high %v1036_v24, %v1036_v24  ;;  %1058 = vst [vmem:[%s2125_s7 + $0x13] sm:$0x1] %v1044_v25  ;;  %1325 = vst.sshfl [vmem:[%s2125_s7 + $0x2b] sm:$0x1 pattern:$0x73625140] %v1015_v22 }
 0x2af   :  { %v1047_v29 = vcombine.high %v1043_v26, %v1043_v26  ;;  %1059 = vst [vmem:[%s2125_s7 + $0x1b] sm:$0x1] %v1046_v28  ;;  %1062 = vst [vmem:[%s2125_s7 + $0x33] sm:$0x1] %v1045_v27 }
 0x2b1   :  { %1063 = vst [vmem:[%s2125_s7 + $0x3b] sm:$0x1] %v1047_v29 }
 0x37c   :  { %v1220_v30 = vpop.f32.mrb[8].mxu0 }
 0x37d   :  { %v1221_v31 = vadd.f32 %v1923_v56, %v1220_v30  ;;  %v1547_v32 = vpop.f32.mrb[9].mxu0 }
 0x37f   :  { %v1225_v33 = vcombine.high %v1221_v31, %v1221_v31  ;;  %v1232_v15 = vrot.slane %v1221_v31, %v1925_v58 }
 0x381   :  { %v1239_v34 = vrot.slane %v1225_v33, %v1925_v58  ;;  %v1240_v13 = vcombine.high %v1232_v15, %v1232_v15  ;;  %v1248_v35 = vrot.slane %v1232_v15, %v1925_v58  ;;  %1329 = vst.sshfl [vmem:[%s2125_s7 + $0x4] sm:$0x1 pattern:$0x73625140] %v1232_v15 }
 0x383   :  { %v1241_v36 = vcombine.high %v1239_v34, %v1239_v34  ;;  %v1255_v37 = vrot.slane %v1239_v34, %v1925_v58  ;;  %v1262_v38 = vrot.slane %v1240_v13, %v1925_v58  ;;  %v1270_v40 = vcombine.high %v1248_v35, %v1248_v35  ;;  %1330 = vst.sshfl [vmem:[%s2125_s7 + $0xc] sm:$0x1 pattern:$0x73625140] %v1240_v13 }
 0x384   :  { %1331 = vst.sshfl [vmem:[%s2125_s7 + $0x24] sm:$0x1 pattern:$0x73625140] %v1239_v34 }
 0x385   :  { %v1269_v56 = vrot.slane %v1241_v36, %v1925_v58  ;;  %v1271_v41 = vcombine.high %v1255_v37, %v1255_v37  ;;  %v1272_v42 = vcombine.high %v1262_v38, %v1262_v38  ;;  %1284 = vst [vmem:[%s2125_s7 + $0x14] sm:$0x1] %v1270_v40  ;;  %1332 = vst.sshfl [vmem:[%s2125_s7 + $0x2c] sm:$0x1 pattern:$0x73625140] %v1241_v36 }
 0x387   :  { %v1273_v43 = vcombine.high %v1269_v56, %v1269_v56  ;;  %1285 = vst [vmem:[%s2125_s7 + $0x1c] sm:$0x1] %v1272_v42  ;;  %1288 = vst [vmem:[%s2125_s7 + $0x34] sm:$0x1] %v1271_v41 }
 0x389   :  { %1289 = vst [vmem:[%s2125_s7 + $0x3c] sm:$0x1] %v1273_v43 }

</bundles_post_ra>
